<compile_context>
chip_gen: v6e
topology: v6e:2x2x1
jax: 0.10.0
libtpu: 0.0.40
codegen_flags: <defaults>
</compile_context>

<pallas_src>
import jax
import jax.numpy as jnp
from jax.experimental import pallas as pl
from jax.experimental.pallas import tpu as pltpu


def _round_up(x: int, m: int) -> int:
    return (x + m - 1) // m * m


def _sublane_granule(dtype) -> int:
    # Native sublane tiling: 8 rows for 32-bit, 16 for 16-bit, 32 for 8-bit.
    itemsize = jnp.dtype(dtype).itemsize
    return max(8, 32 // max(1, itemsize))


def _tpu_vmem_and_cores():
    """Return (physical per-core VMEM bytes, has_two_tensorcores).

    Falls back to the smallest per-core VMEM of any supported generation
    (64 MiB) so the tiling always fits even if the probe fails.
    """
    try:
        info = pltpu.get_tpu_info()
        vmem = int(getattr(info, "vmem_capacity_bytes", 64 << 20))
    except Exception:
        vmem = 64 << 20
    # Only the 64-MiB-per-core generation (v7x) has 2 TensorCores per chip;
    # v5e / v6e have 128 MiB and a single core.
    two_cores = vmem <= (64 << 20)
    return vmem, two_cores


def _dimshuffle_kernel(x_ref, o_ref):
    # x_ref: (B_TILE, C, L) input block.  o_ref: (B_TILE, L*C) lane-dense slab.
    bt, c, l = x_ref.shape
    # The transpose+reshape IS the relayout work (XLU/VPU); the perf lever is
    # that the store below is a wide, unmasked, lane-dense vst.
    xt = jnp.transpose(x_ref[...], (0, 2, 1))      # (B_TILE, L, C)
    o_ref[...] = xt.reshape(bt, l * c)


def lambda_dimshuffle(x: jax.Array) -> jax.Array:
    """Pallas implementation of Lambda(lambda x: x.permute(0, 2, 1)).

    Args:
      x: array of shape (N, C, L), any dtype.
    Returns:
      array of shape (N, L, C), same dtype.
    """
    n, c, l = x.shape
    itemsize = jnp.dtype(x.dtype).itemsize
    sub = _sublane_granule(x.dtype)

    # Padded VMEM bytes per batch sample (what the tiles actually occupy).
    in_bytes_per_sample = _round_up(c, sub) * _round_up(l, 128) * itemsize
    out_bytes_per_sample = _round_up(l * c, 128) * itemsize
    per_sample = in_bytes_per_sample + out_bytes_per_sample

    vmem_phys, two_cores = _tpu_vmem_and_cores()
    # Budget for the double-buffered (2x in + 2x out) pipeline tiles, leaving
    # headroom under physical VMEM; scoped limit raised above the default.
    budget_total = min((vmem_phys * 9) // 16, 72 << 20)    # 36 MiB / 72 MiB
    vmem_limit = int(min((vmem_phys * 3) // 4, 96 << 20))  # 48 MiB / 96 MiB

    max_bt = max(1, budget_total // (2 * per_sample))
    if two_cores and n >= 2:
        # Dual-TensorCore chip only: keep >= 2 grid steps so both cores work.
        max_bt = min(max_bt, pl.cdiv(n, 2))

    if max_bt >= n:
        b_tile = n                                    # full-extent batch block
    else:
        # Multiple of the sublane granule so the (b_tile, L*C) output block
        # satisfies the (sublane, 128) layout rule without sublane masking.
        b_tile = min(n, max(sub, (max_bt // sub) * sub))

    grid = (pl.cdiv(n, b_tile),)

    # Pure-copy roofline hint for XLA's scheduler: no flops, 2*N*C*L bytes.
    cost = pl.CostEstimate(
        flops=0,
        transcendentals=0,
        bytes_accessed=2 * n * c * l * itemsize,
    )

    flat = pl.pallas_call(
        _dimshuffle_kernel,
        out_shape=jax.ShapeDtypeStruct((n, l * c), x.dtype),
        grid=grid,
        # Input block covers the full (C, L) extents -> (8, 128) rule satisfied
        # by the full-extent clause; output block is lane-dense (L*C wide).
        in_specs=[pl.BlockSpec((b_tile, c, l), lambda i: (i, 0, 0))],
        out_specs=pl.BlockSpec((b_tile, l * c), lambda i: (i, 0)),
        compiler_params=pltpu.CompilerParams(
            dimension_semantics=("parallel",),
            vmem_limit_bytes=vmem_limit,
        ),
        cost_estimate=cost,
    )(x)

    # (N, L*C) and (N, L, C) share the same row-major bytes: free reshape.
    return flat.reshape(n, l, c)


class LambdaPallas:
    """Mirror of the PyTorch Lambda module: holds f and applies it."""

    def __init__(self, f):
        self.f = f

    def __call__(self, x):
        return self.f(x)


if __name__ == "__main__":
    module = LambdaPallas(lambda_dimshuffle)

    # Canonical LSTM-FCN dimension-shuffle input: batch=2, channels=4, length=16.
    x = jax.random.normal(jax.random.PRNGKey(0), (2, 4, 16), dtype=jnp.float32)
    out = jax.block_until_ready(module(x))
    ref = jnp.transpose(x, (0, 2, 1))
    assert out.shape == (2, 16, 4), out.shape
    assert out.dtype == x.dtype
    assert jnp.array_equal(out, ref), "Pallas Lambda mismatch (small f32)"

    # Larger batch: multi-sample tile; on the dual-core generation this runs
    # as a 2-step parallel grid.
    x2 = jax.random.normal(jax.random.PRNGKey(1), (16, 8, 128), dtype=jnp.float32)
    out2 = jax.block_until_ready(module(x2))
    assert jnp.array_equal(out2, jnp.transpose(x2, (0, 2, 1))), "mismatch (big f32)"

    # Sub-32-bit dtype path (sublane granule 16).
    x3 = jax.random.normal(jax.random.PRNGKey(2), (4, 8, 32)).astype(jnp.bfloat16)
    out3 = jax.block_until_ready(module(x3))
    assert out3.shape == (4, 32, 8)
    assert jnp.array_equal(out3, jnp.transpose(x3, (0, 2, 1))), "mismatch (bf16)"

    print("KERNEL_OK")
</pallas_src>

<mosaic_0001>
module attributes {stable_mosaic.version = 11 : i64} {
  func.func @_dimshuffle_kernel(%arg0: i32, %arg1: memref<2x4x16xf32, #tpu.memory_space<vmem>>, %arg2: memref<2x64xf32, #tpu.memory_space<vmem>>) attributes {dimension_semantics = [#tpu.dimension_semantics<parallel>], iteration_bounds = array<i64: 1>, scalar_prefetch = 0 : i64, scratch_operands = 0 : i64, tpu.core_type = #tpu.core_type<tc>, window_params = [{transform_indices = @transform_0, window_bounds = array<i64: 2, 4, 16>}, {transform_indices = @transform_1, window_bounds = array<i64: 2, 64>}]} {
    %c0 = arith.constant 0 : index
    %c0_0 = arith.constant 0 : index
    %c0_1 = arith.constant 0 : index
    %0 = vector.load %arg1[%c0, %c0_0, %c0_1] : memref<2x4x16xf32, #tpu.memory_space<vmem>>, vector<2x4x16xf32>
    %1 = tpu.transpose %0, [0, 2, 1] : vector<2x4x16xf32> -> vector<2x16x4xf32>
    %2 = vector.shape_cast %1 : vector<2x16x4xf32> to vector<2x64xf32>
    %c0_2 = arith.constant 0 : index
    %c0_3 = arith.constant 0 : index
    %3 = vector.load %arg2[%c0_2, %c0_3] : memref<2x64xf32, #tpu.memory_space<vmem>>, vector<2x64xf32>
    tpu.vector_store %arg2[%c0_2, %c0_3], %2 {strides = array<i32>} : memref<2x64xf32, #tpu.memory_space<vmem>>, vector<2x64xf32>,
    return
  }
  func.func @transform_0(%arg0: i32) -> (i32, i32, i32) {
    %c0_i32 = arith.constant 0 : i32
    %c0_i32_0 = arith.constant 0 : i32
    %c0_i32_1 = arith.constant 0 : i32
    return %arg0, %c0_i32, %c0_i32_0 : i32, i32, i32
  }
  func.func @transform_1(%arg0: i32) -> (i32, i32) {
    %c0_i32 = arith.constant 0 : i32
    %c0_i32_0 = arith.constant 0 : i32
    return %arg0, %c0_i32 : i32, i32
  }
}

</mosaic_0001>

<bundles_post_ra>
// kernel: tpu_custom_call.1
= control target key start
LH: loop header
LB: loop body
LE: loop exit
PB: predicated region body
PF: predicated region fallthrough
CT: control target
= control target key end

     0   :  { %6 = vsyncpa [#allocation3], 0  ;;  %s448_s0 = inlined_call_operand.hbm [shape: f32[2,4,16], index: 0, kind: input, shape index: {}]   ;;  %s449_s1 = inlined_call_operand.hbm [shape: f32[2,64], index: 1, kind: output, shape index: {}]  }
   0x1   :  { %7 = vsyncpa [#allocation4], 0  ;;  %s393_s6 = smov [#allocation2]  }
   0x2   :  { %s13_s7 = sshll.u32 %s393_s6, 4  ;;  %s14_s7 = int_to_ptr.vmem [resolvable:$true] %s13_s7 }
   0x3   :  { %s357_s8 = scalar_lea.vmem %s14_s7, 128  ;;  %p362_p1 = scmp.lt.s32.totalorder %s14_s7, %s14_s7 }
   0x4   :  { %p358_p0 = scmp.ne.s32.totalorder %s14_s7, %s357_s8  ;;  %p363_p2 = scmp.lt.s32.totalorder %s357_s8, %s357_s8 }
   0x6   :  { %p364_p3 = por %p363_p2, %p362_p1 }
   0x8   :  { %p365_p4 = pnand %p364_p3, %p358_p0 }
   0xa   :  { %368 = shalt.err (!%p365_p4)
}
   0xb   :  { %s394_s9 = smov 64   ;;  %s395_s10 = smov 4  }
   0xc   :  { %19 = dma.hbm_to_vmem [thread:$0]  %s448_s0, 128, %s14_s7, [#allocation3], %s394_s9, %s394_s9, %s395_s10  }
   0xd   :  { %389 = dma.done.wait [#allocation3], 128  }
   0xe   :  { %390 = vsyncadd [#allocation3], 4294967168  ;;  %v23_v0 = vld [vmem:[#allocation2] sm:$0xf]  ;;  %v24_v1 = vld [vmem:[#allocation2 + $0x4] sm:$0xf]  ;;  %v93_v4 = vlaneseq }
   0xf   :  { %25 = vxpose.xlu0.b32.start.end [1/1] (short) (narrow) %v23_v0, 16  ;;  %v396_v2 = vmov 1983009808   ;;  %v397_v8 = vmov 1934713408   ;;  %v398_v13 = vmov 0.0  }
  0x10   :  { %v91_v3 = vunpack.c.l.s4 %v396_v2  ;;  %v94_v7 = vshrl.u32 %v93_v4, 7  ;;  %v122_v9 = vunpack.c.l.s4 %v397_v8  ;;  %s399_s0 = smov 8   ;;  %s400_s13 = smov 16   ;;  %vm281_vm0 = vcmask 31744  }
  0x11   :  { %s401_s14 = smov 12   ;;  %s402_s15 = smov 24   ;;  %vm283_vm1 = vcmask 64512   ;;  %vm285_vm2 = vcmask 97280   ;;  %vm287_vm3 = vcmask 130048   ;;  %vm289_vm4 = vcmask 162816  }
  0x12   :  { %v92_v6 = vunpack.c.0.s8 %v91_v3  ;;  %v123_v12 = vunpack.c.0.s8 %v122_v9  ;;  %s403_s16 = smov 20   ;;  %s404_s17 = smov 28   ;;  %vm291_vm5 = vcmask 195584   ;;  %vm293_vm6 = vcmask 228352  }
  0x13   :  { %s405_s18 = smov 32   ;;  %s406_s19 = smov 40   ;;  %vm295_vm7 = vcmask 261120   ;;  %vm297_vm8 = vcmask 293888   ;;  %vm299_vm9 = vcmask 326656   ;;  %vm301_vm10 = vcmask 359424  }
  0x14   :  { %57 = vxpose.xlu0.b32.start.end [1/1] (short) (narrow) %v24_v1, 16  ;;  %v95_v11 = vsub.s32 %v92_v6, %v94_v7  ;;  %v126_v19 = vsub.s32 %v123_v12, %v94_v7  ;;  %s407_s20 = smov 36   ;;  %s408_s21 = smov 44   ;;  %vm303_vm11 = vcmask 392192   ;;  %vm305_vm12 = vcmask 424960  }
  0x15   :  { %s409_s22 = smov 48   ;;  %s410_s23 = smov 56   ;;  %vm307_vm13 = vcmask 457728   ;;  %vm309_vm14 = vcmask 490496   ;;  %vm311_vm15 = vcmask 517120  }
  0x16   :  { %s411_s24 = smov 52   ;;  %s412_s25 = smov 60  }
  0x17   :  { %s413_s26 = smov [#allocation5]  }
  0x18   :  { %s319_s27 = sshll.u32 %s413_s26, 4  ;;  %s320_s27 = int_to_ptr.vmem [resolvable:$true] %s319_s27 }
  0x19   :  { %s369_s28 = scalar_lea.vmem %s320_s27, 32  ;;  %p374_p6 = scmp.lt.s32.totalorder %s320_s27, %s320_s27 }
  0x1a   :  { %p370_p5 = scmp.ne.s32.totalorder %s320_s27, %s369_s28  ;;  %p375_p7 = scmp.lt.s32.totalorder %s369_s28, %s369_s28 }
  0x1c   :  { %p376_p8 = por %p375_p7, %p374_p6 }
  0x1e   :  { %p377_p9 = pnand %p376_p8, %p370_p5 }
  0x8b   :  { %v41_v5 = vpop.trf.xlu0 }
  0x8c   :  { %v89_v14 = vcombine.high %v41_v5, %v398_v13  ;;  %v96_v16 = vrot.slane %v41_v5, %v95_v11 }
  0x8e   :  { %v103_v20 = vrot.slane %v89_v14, %v95_v11 }
  0x8f   :  { %v42_v10 = vpop.trf.xlu0 }
  0x90   :  { %v162_v35 = vrot.slane %v42_v10, %v95_v11  ;;  %v155_v42 = vcombine.high %v42_v10, %v398_v13 }
  0x92   :  { %v169_v45 = vrot.slane %v155_v42, %v95_v11 }
  0x93   :  { %v73_v15 = vpop.trf.xlu0 }
  0x94   :  { %v104_v17 = vcombine.high %v73_v15, %v398_v13  ;;  %v111_v18 = vrot.slane %v73_v15, %v95_v11 }
  0x96   :  { %v118_v21 = vrot.slane %v104_v17, %v95_v11  ;;  %v119_v22 = vcombine.low %v96_v16, %v111_v18  ;;  %v120_v23 = vcombine.high %v96_v16, %v111_v18 }
  0x97   :  { %v74_v32 = vpop.trf.xlu0 }
  0x98   :  { %v135_v24 = vcombine.low %v103_v20, %v118_v21  ;;  %v134_v25 = vrot.slane %v120_v23, %v126_v19  ;;  %v430_v26 = vrot.slane %v119_v22, %v126_v19  ;;  %v136_v29 = vcombine.high %v103_v20, %v118_v21 }
  0x99   :  { %v177_v33 = vrot.slane %v74_v32, %v95_v11  ;;  %v170_v40 = vcombine.high %v74_v32, %v398_v13 }
  0x9a   :  { %v143_v27 = vrot.slane %v135_v24, %v126_v19  ;;  %226 = vrot.lane.b32.xlu1 %v134_v25, %s399_s0  ;;  %v151_v28 = vcombine.high %v430_v26, %v398_v13  ;;  %v152_v30 = vcombine.high %v134_v25, %v398_v13  ;;  %v150_v31 = vrot.slane %v136_v29, %v126_v19 }
  0x9b   :  { %v185_v36 = vcombine.low %v162_v35, %v177_v33  ;;  %v186_v38 = vcombine.high %v162_v35, %v177_v33  ;;  %v184_v43 = vrot.slane %v170_v40, %v95_v11 }
  0x9c   :  { %234 = vrot.lane.b32.xlu0 %v143_v27, %s400_s13  ;;  %v153_v34 = vcombine.high %v143_v27, %v398_v13  ;;  %v154_v37 = vcombine.high %v150_v31, %v398_v13 }
  0x9d   :  { %v193_v39 = vrot.slane %v185_v36, %v126_v19  ;;  %v200_v41 = vrot.slane %v186_v38, %v126_v19  ;;  %v201_v46 = vcombine.low %v169_v45, %v184_v43  ;;  %v202_v48 = vcombine.high %v169_v45, %v184_v43 }
  0x9e   :  { %222 = vrot.lane.b32.xlu1 %v151_v28, %s395_s10 }
  0x9f   :  { %v217_v44 = vcombine.high %v193_v39, %v398_v13  ;;  %v218_v47 = vcombine.high %v200_v41, %v398_v13  ;;  %v209_v49 = vrot.slane %v201_v46, %v126_v19  ;;  %v216_v50 = vrot.slane %v202_v48, %v126_v19 }
  0xa1   :  { %v219_v51 = vcombine.high %v209_v49, %v398_v13  ;;  %v220_v52 = vcombine.high %v216_v50, %v398_v13 }
  0xa2   :  { %230 = vrot.lane.b32.xlu1 %v152_v30, %s401_s14 }
  0xa6   :  { %242 = vrot.lane.b32.xlu1 %v150_v31, %s402_s15 }
  0xaa   :  { %238 = vrot.lane.b32.xlu1 %v153_v34, %s403_s16 }
  0xae   :  { %246 = vrot.lane.b32.xlu1 %v154_v37, %s404_s17 }
  0xb2   :  { %250 = vrot.lane.b32.xlu1 %v193_v39, %s405_s18 }
  0xb6   :  { %258 = vrot.lane.b32.xlu1 %v200_v41, %s406_s19 }
  0xba   :  { %254 = vrot.lane.b32.xlu1 %v217_v44, %s407_s20 }
  0xbe   :  { %262 = vrot.lane.b32.xlu1 %v218_v47, %s408_s21 }
  0xc2   :  { %266 = vrot.lane.b32.xlu1 %v209_v49, %s409_s22 }
  0xc6   :  { %274 = vrot.lane.b32.xlu1 %v216_v50, %s410_s23 }
  0xca   :  { %270 = vrot.lane.b32.xlu1 %v219_v51, %s411_s24 }
  0xce   :  { %278 = vrot.lane.b32.xlu1 %v220_v52, %s412_s25 }
 0x10c   :  { %v227_v53 = vpop.permute.xlu1 %226 }
 0x10e   :  { %v235_v1 = vpop.permute.xlu0 %234 }
 0x110   :  { %v223_v54 = vpop.permute.xlu1 %222 }
 0x111   :  { %v282_v61 = vsel %vm281_vm0, %v430_v26, %v223_v54 }
 0x112   :  { %v284_v62 = vsel %vm283_vm1, %v282_v61, %v227_v53 }
 0x114   :  { %v231_v55 = vpop.permute.xlu1 %230 }
 0x115   :  { %v286_v0 = vsel %vm285_vm2, %v284_v62, %v231_v55 }
 0x116   :  { %v288_v2 = vsel %vm287_vm3, %v286_v0, %v235_v1 }
 0x118   :  { %v243_v56 = vpop.permute.xlu1 %242 }
 0x11c   :  { %v239_v57 = vpop.permute.xlu1 %238 }
 0x11d   :  { %v290_v4 = vsel %vm289_vm4, %v288_v2, %v239_v57 }
 0x11e   :  { %v292_v5 = vsel %vm291_vm5, %v290_v4, %v243_v56 }
 0x120   :  { %v247_v58 = vpop.permute.xlu1 %246 }
 0x121   :  { %v294_v7 = vsel %vm293_vm6, %v292_v5, %v247_v58 }
 0x124   :  { %v251_v59 = vpop.permute.xlu1 %250 }
 0x125   :  { %v296_v8 = vsel %vm295_vm7, %v294_v7, %v251_v59 }
 0x128   :  { %v259_v60 = vpop.permute.xlu1 %258 }
 0x12c   :  { %v255_v63 = vpop.permute.xlu1 %254 }
 0x12d   :  { %v298_v9 = vsel %vm297_vm8, %v296_v8, %v255_v63 }
 0x12e   :  { %v300_v11 = vsel %vm299_vm9, %v298_v9, %v259_v60 }
 0x130   :  { %v263_v3 = vpop.permute.xlu1 %262 }
 0x131   :  { %v302_v12 = vsel %vm301_vm10, %v300_v11, %v263_v3 }
 0x134   :  { %v267_v6 = vpop.permute.xlu1 %266 }
 0x135   :  { %v304_v13 = vsel %vm303_vm11, %v302_v12, %v267_v6 }
 0x138   :  { %v275_v10 = vpop.permute.xlu1 %274 }
 0x13c   :  { %v271_v14 = vpop.permute.xlu1 %270 }
 0x13d   :  { %v306_v15 = vsel %vm305_vm12, %v304_v13, %v271_v14 }
 0x13e   :  { %v308_v17 = vsel %vm307_vm13, %v306_v15, %v275_v10 }
 0x140   :  { %v279_v16 = vpop.permute.xlu1 %278 }
 0x141   :  { %v310_v18 = vsel %vm309_vm14, %v308_v17, %v279_v16 }
 0x142   :  { %312 = vst.msk [vmem:[#allocation5] sm:$0x3] %vm311_vm15, %v310_v18 }
 0x143   :  { %380 = shalt.err (!%p377_p9)
}
 0x144   :  { %322 = dma.vmem_to_hbm [thread:$0]  %s320_s27, 32, %s449_s1, [#allocation4]  }
 0x145   :  { %391 = dma.done.wait [#allocation4], 32  }
 0x146   :  { %392 = vsyncadd [#allocation4], 4294967264 }
 0x147   :  { %326 = vsyncpa [#allocation3], 1 }
 0x148   :  { %327 = vsyncpa [#allocation4], 1 }

</bundles_post_ra>
